<compile_context>
chip_gen: v5e
topology: v5e:2x2
jax: 0.10.0
libtpu: 0.0.40
codegen_flags: <defaults>
</compile_context>

<pallas_src>
import functools

import jax
import jax.numpy as jnp
from jax.experimental import pallas as pl
from jax.experimental.pallas import tpu as pltpu

NUM_GROUPS = 8
EPS = 1e-5
NC_PAD = 128                 # lane-dense classifier width (pad nr_classes -> 128)
MAX_ROW_TILE = 2048

# int32-safe Knuth-style hash multiplier (the raw 2654435761 overflows int32).
_HASH_MULT = 2654435761 % (2 ** 31)


# ----------------------------------------------------------------------------
# Generation-aware VMEM budgeting
# ----------------------------------------------------------------------------
def _vmem_capacity_bytes():
    try:
        info = pltpu.get_tpu_info()
        cap = getattr(info, "vmem_capacity_bytes", None)
        if cap:
            return int(cap)
    except Exception:
        pass
    return 64 * 1024 * 1024          # conservative default (v7x per-TensorCore)


_VMEM_CAP = _vmem_capacity_bytes()
if _VMEM_CAP <= 64 * 1024 * 1024:    # v7x-class: 64 MiB per TensorCore
    TILE_BUDGET_BYTES = 24 * 1024 * 1024
    VMEM_LIMIT_BYTES = 48 * 1024 * 1024
else:                                # v5e / v6e: 128 MiB
    TILE_BUDGET_BYTES = 64 * 1024 * 1024
    VMEM_LIMIT_BYTES = 100 * 1024 * 1024


def _round8_up(v):
    return max(8, ((v + 7) // 8) * 8)


def _row_tile(m, row_bytes, *, min_steps=4):
    """Largest row tile that fits the double-buffered VMEM budget, capped so the
    grid keeps >= min_steps steps (so both v7x TensorCores receive work)."""
    if m <= 8 or m % 8 != 0:
        return m                      # single full-extent block (always legal)
    max_tile = (TILE_BUDGET_BYTES // (2 * max(row_bytes, 1))) // 8 * 8
    max_tile = max(8, min(MAX_ROW_TILE, max_tile))
    target = _round8_up(pl.cdiv(m, min_steps))
    return int(min(max_tile, target, m))


# ----------------------------------------------------------------------------
# Pallas kernels
# ----------------------------------------------------------------------------
def _fused_layer_kernel(*refs, apply_affine, apply_relu, add_residual,
                        emit_stats, mask_rows, tile, nrows):
    """(x*scale+shift) -> ReLU -> bf16 MXU matmul -> +bias (-> +residual),
    optionally emitting per-tile channel sums / sums-of-squares of the f32
    result (GroupNorm stats for the *next* layer)."""
    idx = 0
    x_ref = refs[idx]; idx += 1
    if apply_affine:
        scale_ref = refs[idx]; shift_ref = refs[idx + 1]; idx += 2
    w_ref = refs[idx]; b_ref = refs[idx + 1]; idx += 2
    res_ref = None
    if add_residual:
        res_ref = refs[idx]; idx += 1
    o_ref = refs[idx]; idx += 1
    sum_ref = sq_ref = None
    if emit_stats:
        sum_ref = refs[idx]; sq_ref = refs[idx + 1]

    # Elementwise math in f32 (v5e has no bf16 VPU; matches GN precision).
    x = x_ref[...].astype(jnp.float32)
    if apply_affine:
        x = x * scale_ref[...] + shift_ref[...]
    if apply_relu:
        x = jnp.maximum(x, 0.0)
    y = jnp.dot(x.astype(jnp.bfloat16), w_ref[...],
                preferred_element_type=jnp.float32)
    y = y + b_ref[...]
    if add_residual:
        y = y + res_ref[...].astype(jnp.float32)
    o_ref[...] = y.astype(o_ref.dtype)

    if emit_stats:
        if mask_rows:       # mask padded rows of the partial trailing tile
            rows = jax.lax.broadcasted_iota(jnp.int32, y.shape, 0)
            valid = (pl.program_id(0) * tile + rows) < nrows
            ys = jnp.where(valid, y, 0.0)
            yq = jnp.where(valid, y * y, 0.0)
        else:
            ys = y
            yq = y * y
        s = jnp.sum(ys, axis=0, keepdims=True)          # (1, cout)
        q = jnp.sum(yq, axis=0, keepdims=True)
        sum_ref[...] = jnp.broadcast_to(s[:, None, :], sum_ref.shape)
        sq_ref[...] = jnp.broadcast_to(q[:, None, :], sq_ref.shape)


def fused_linear(x, w, b, *, scale=None, shift=None, apply_relu=True,
                 residual=None, emit_stats=False, out_dtype=jnp.bfloat16):
    """Row-tiled, pipelined GN(scale/shift)+ReLU+matmul(+residual) layer."""
    m, cin = x.shape
    cout = w.shape[1]
    out_itemsize = jnp.dtype(out_dtype).itemsize

    row_bytes = cin * (x.dtype.itemsize + 4) + cout * (out_itemsize + 4)
    if residual is not None:
        row_bytes += cout * residual.dtype.itemsize
    tile = _row_tile(m, row_bytes)
    grid_n = int(pl.cdiv(m, tile))

    apply_affine = scale is not None
    add_residual = residual is not None
    mask_rows = emit_stats and (m % tile != 0)

    in_specs = [pl.BlockSpec((tile, cin), lambda i: (i, 0))]
    args = [x]
    bytes_accessed = m * cin * x.dtype.itemsize
    if apply_affine:
        in_specs += [pl.BlockSpec((1, cin), lambda i: (0, 0)),
                     pl.BlockSpec((1, cin), lambda i: (0, 0))]
        args += [scale.reshape(1, cin).astype(jnp.float32),
                 shift.reshape(1, cin).astype(jnp.float32)]
        bytes_accessed += 2 * cin * 4
    in_specs += [pl.BlockSpec((cin, cout), lambda i: (0, 0)),
                 pl.BlockSpec((1, cout), lambda i: (0, 0))]
    args += [w.astype(jnp.bfloat16), b.reshape(1, cout).astype(jnp.float32)]
    bytes_accessed += cin * cout * 2 + cout * 4
    if add_residual:
        in_specs.append(pl.BlockSpec((tile, cout), lambda i: (i, 0)))
        args.append(residual)
        bytes_accessed += m * cout * residual.dtype.itemsize

    bytes_accessed += m * cout * out_itemsize
    if emit_stats:
        out_shape = (jax.ShapeDtypeStruct((m, cout), out_dtype),
                     jax.ShapeDtypeStruct((grid_n, 8, cout), jnp.float32),
                     jax.ShapeDtypeStruct((grid_n, 8, cout), jnp.float32))
        out_specs = (pl.BlockSpec((tile, cout), lambda i: (i, 0)),
                     pl.BlockSpec((1, 8, cout), lambda i: (i, 0, 0)),
                     pl.BlockSpec((1, 8, cout), lambda i: (i, 0, 0)))
        bytes_accessed += 2 * grid_n * 8 * cout * 4
    else:
        out_shape = jax.ShapeDtypeStruct((m, cout), out_dtype)
        out_specs = pl.BlockSpec((tile, cout), lambda i: (i, 0))

    kern = functools.partial(_fused_layer_kernel,
                             apply_affine=apply_affine,
                             apply_relu=apply_relu,
                             add_residual=add_residual,
                             emit_stats=emit_stats,
                             mask_rows=mask_rows,
                             tile=tile, nrows=m)
    outs = pl.pallas_call(
        kern,
        out_shape=out_shape,
        grid=(grid_n,),
        in_specs=in_specs,
        out_specs=out_specs,
        compiler_params=pltpu.CompilerParams(
            dimension_semantics=("parallel",),
            vmem_limit_bytes=VMEM_LIMIT_BYTES),
        cost_estimate=pl.CostEstimate(flops=2 * m * cin * cout,
                                      transcendentals=0,
                                      bytes_accessed=int(bytes_accessed)),
    )(*args)

    if emit_stats:
        y, ssum, ssq = outs
        return y, (ssum[:, 0, :], ssq[:, 0, :], m)
    return outs


def _classify_logsoftmax_kernel(x_ref, w_ref, b_ref, logp_ref, sv_ref, *, nc):
    """Lane-dense classifier: bf16 matmul + bias + column-masked log-softmax."""
    x = x_ref[...].astype(jnp.float32)
    sv = jnp.dot(x.astype(jnp.bfloat16), w_ref[...],
                 preferred_element_type=jnp.float32)
    sv = sv + b_ref[...]
    sv_ref[...] = sv
    col = jax.lax.broadcasted_iota(jnp.int32, sv.shape, 1)
    svm = jnp.where(col < nc, sv, -1e30)          # mask padded class columns
    mx = jnp.max(svm, axis=1, keepdims=True)
    lse = jnp.log(jnp.sum(jnp.exp(svm - mx), axis=1, keepdims=True)) + mx
    logp_ref[...] = svm - lse


def classify_logsoftmax(x, w_pad, b_pad, nc):
    """x: [N, C] barycentric-sliced point features; w_pad: [C, 128] padded."""
    n, c = x.shape
    ncp = w_pad.shape[1]
    row_bytes = c * (x.dtype.itemsize + 4) + 2 * ncp * 4
    tile = _row_tile(n, row_bytes)
    grid_n = int(pl.cdiv(n, tile))
    kern = functools.partial(_classify_logsoftmax_kernel, nc=nc)
    logp, sv = pl.pallas_call(
        kern,
        out_shape=(jax.ShapeDtypeStruct((n, ncp), jnp.float32),
                   jax.ShapeDtypeStruct((n, ncp), jnp.float32)),
        grid=(grid_n,),
        in_specs=[pl.BlockSpec((tile, c), lambda i: (i, 0)),
                  pl.BlockSpec((c, ncp), lambda i: (0, 0)),
                  pl.BlockSpec((1, ncp), lambda i: (0, 0))],
        out_specs=(pl.BlockSpec((tile, ncp), lambda i: (i, 0)),
                   pl.BlockSpec((tile, ncp), lambda i: (i, 0))),
        compiler_params=pltpu.CompilerParams(
            dimension_semantics=("parallel",),
            vmem_limit_bytes=VMEM_LIMIT_BYTES),
        cost_estimate=pl.CostEstimate(
            flops=2 * n * c * ncp,
            transcendentals=n * ncp,
            bytes_accessed=int(n * c * x.dtype.itemsize + c * ncp * 2
                               + ncp * 4 + 2 * n * ncp * 4)),
    )(x, w_pad.astype(jnp.bfloat16), b_pad.reshape(1, ncp).astype(jnp.float32))
    return logp[:, :nc], sv[:, :nc]


# ----------------------------------------------------------------------------
# GroupNorm statistics -> per-channel scale/shift (folded into the fused kernel)
# ----------------------------------------------------------------------------
def gn_fold(stats, gamma, beta, *, num_groups=NUM_GROUPS, eps=EPS):
    """Finish the tiny cross-tile reduction and fold GN into scale/shift."""
    ssum, ssq, nrows = stats
    c = ssum.shape[-1]
    cg = c // num_groups
    s = jnp.sum(ssum.reshape(-1, num_groups, cg), axis=(0, 2))   # [G]
    q = jnp.sum(ssq.reshape(-1, num_groups, cg), axis=(0, 2))    # [G]
    n = float(nrows * cg)
    mean = s / n
    var = jnp.maximum(q / n - mean * mean, 0.0)       # one-pass variance
    inv = jax.lax.rsqrt(var + eps)
    inv_c = jnp.repeat(inv, cg)
    mean_c = jnp.repeat(mean, cg)
    g = gamma.astype(jnp.float32)
    scale = g * inv_c
    shift = beta.astype(jnp.float32) - g * mean_c * inv_c
    return scale, shift


def activation_stats(x):
    """One-pass fallback for tensors produced by XLA glue (scatter/pool/concat)."""
    xf = x.astype(jnp.float32)
    return (jnp.sum(xf, axis=0, keepdims=True),
            jnp.sum(xf * xf, axis=0, keepdims=True),
            x.shape[0])


# ----------------------------------------------------------------------------
# Parameter construction (deterministic, synthetic)
# ----------------------------------------------------------------------------
def _dense_init(key, cin, cout):
    w = jax.random.normal(key, (cin, cout), dtype=jnp.float32) / jnp.sqrt(float(cin))
    b = jnp.zeros((cout,), jnp.float32)
    return w, b


def _conv_params(key_iter, cin, cout):
    w, b = _dense_init(next(key_iter), cin, cout)
    return dict(gamma=jnp.ones((cin,), jnp.float32),
                beta=jnp.zeros((cin,), jnp.float32),
                w=w.astype(jnp.bfloat16),       # bf16 storage: MXU-native path
                b=b)


def build_lnn(key, nr_classes, mp, d_in, nr_vertices):
    keys = iter(jax.random.split(key, 64))
    p = {'nr_vertices': nr_vertices}

    # PointNet
    start = mp['pointnet_start_nr_channels']
    feat_in = 3 + d_in + 1                      # pos-offset, values, barycentric w
    p['pointnet'] = []
    cin = feat_in
    for c in mp['pointnet_channels_per_layer']:
        p['pointnet'].append(_conv_params(keys, cin, c))
        cin = c
    p['pointnet_last'] = _conv_params(keys, cin, start)

    cur = start
    skip = []
    p['down'], p['coarsen'] = [], []
    for i in range(mp['nr_downsamples']):
        blocks = []
        for _ in range(mp['nr_blocks_down_stage'][i]):
            if i < mp['nr_levels_down_with_normal_resnet']:
                blocks.append(dict(kind='resnet',
                                   conv1=_conv_params(keys, cur, cur),
                                   conv2=_conv_params(keys, cur, cur)))
            else:
                mid = cur // 4
                blocks.append(dict(kind='bottleneck',
                                   conv1=_conv_params(keys, cur, mid),
                                   conv2=_conv_params(keys, mid, mid),
                                   conv3=_conv_params(keys, mid, cur)))
        p['down'].append(blocks)
        skip.append(cur)
        cout = int(cur * 2 * mp['compression_factor'])
        p['coarsen'].append(_conv_params(keys, cur, cout))
        cur = cout

    p['bottleneck'] = []
    for _ in range(mp['nr_blocks_bottleneck']):
        mid = cur // 4
        p['bottleneck'].append(dict(kind='bottleneck',
                                    conv1=_conv_params(keys, cur, mid),
                                    conv2=_conv_params(keys, mid, mid),
                                    conv3=_conv_params(keys, mid, cur)))

    p['finefy'], p['up'] = [], []
    for i in range(mp['nr_downsamples']):
        nskip = skip.pop()
        nfine = cur // 2
        p['finefy'].append(_conv_params(keys, cur, nfine))
        cur = nskip + nfine                     # concat for vertical connection
        blocks = []
        for _ in range(mp['nr_blocks_up_stage'][i]):
            if i >= mp['nr_downsamples'] - mp['nr_levels_up_with_normal_resnet']:
                blocks.append(dict(kind='resnet',
                                   conv1=_conv_params(keys, cur, cur),
                                   conv2=_conv_params(keys, cur, cur)))
            else:
                mid = cur // 4
                blocks.append(dict(kind='bottleneck',
                                   conv1=_conv_params(keys, cur, mid),
                                   conv2=_conv_params(keys, mid, mid),
                                   conv3=_conv_params(keys, mid, cur)))
        p['up'].append(blocks)

    # Classifier: lane-dense padded to NC_PAD columns (zero beyond nr_classes).
    sw, sb = _dense_init(next(keys), cur, nr_classes)
    ncp = max(NC_PAD, ((nr_classes + 127) // 128) * 128)
    w_pad = jnp.zeros((cur, ncp), jnp.float32).at[:, :nr_classes].set(sw)
    b_pad = jnp.zeros((ncp,), jnp.float32).at[:nr_classes].set(sb)
    p['slice'] = dict(w=w_pad.astype(jnp.bfloat16), b=b_pad, nc=nr_classes)
    return p


# ----------------------------------------------------------------------------
# Forward pass
# ----------------------------------------------------------------------------
def apply_conv(x, cp, *, stats=None, apply_gn=True, apply_relu=True,
               residual=None, emit_stats=True):
    """GN(ReLU(conv)) layer; returns (y, stats_of_y_or_None)."""
    if apply_gn:
        if stats is None:
            stats = activation_stats(x)
        scale, shift = gn_fold(stats, cp['gamma'], cp['beta'])
    else:
        scale = shift = None
    out = fused_linear(x, cp['w'], cp['b'], scale=scale, shift=shift,
                       apply_relu=apply_relu, residual=residual,
                       emit_stats=emit_stats)
    if emit_stats:
        return out
    return out, None


def apply_block(lv, lv_stats, bp):
    identity = lv
    # TODO(synk): real GnReluConv gathers 2*pos_dim+1 permutohedral neighbours;
    #             approximated with a 1x1 (channel-mixing) conv here.
    if bp['kind'] == 'resnet':
        x, s = apply_conv(lv, bp['conv1'], stats=lv_stats)
        x, s = apply_conv(x, bp['conv2'], stats=s, residual=identity)
    else:  # bottleneck
        x, s = apply_conv(lv, bp['conv1'], stats=lv_stats)
        x, s = apply_conv(x, bp['conv2'], stats=s)
        x, s = apply_conv(x, bp['conv3'], stats=s, residual=identity)
    return x, s


def synthetic_distribute(positions, values, nr_vertices, n_splat=4):
    # TODO(synk): DistributeLatticeModule is a CUDA permutohedral-hash op; this is a
    #             deterministic synthetic stand-in producing (distributed, indices, weights).
    scaled = positions * 10.0
    base = jnp.floor(scaled).astype(jnp.int32)
    frac = scaled - jnp.floor(scaled)
    h = base[:, 0] * 73856093 + base[:, 1] * 19349663 + base[:, 2] * 83492791
    ks = jnp.arange(n_splat, dtype=jnp.int32)
    indices = jnp.mod(h[:, None] + ks[None, :] * _HASH_MULT,
                      nr_vertices).astype(jnp.int32)
    raw_w = jnp.stack([frac[:, 0], frac[:, 1], frac[:, 2],
                       1.0 - jnp.mean(frac, axis=1)], axis=1) + 0.1
    weights = raw_w / jnp.sum(raw_w, axis=1, keepdims=True)

    val_rep = jnp.repeat(values, n_splat, axis=0)
    w_flat = weights.reshape(-1, 1)
    pos_off = jnp.repeat(frac, n_splat, axis=0)
    distributed = jnp.concatenate([pos_off, val_rep, w_flat], axis=1)
    return distributed, indices, weights


def lnn_forward(params, mp, positions, values):
    v0 = params['nr_vertices']
    distributed, indices, weights = synthetic_distribute(positions, values, v0)

    # PointNet: per-splat MLP (fused Pallas layers) + scatter-max into vertices.
    x, stats = distributed, None
    n_pn = len(params['pointnet'])
    for li, cp in enumerate(params['pointnet']):
        x, stats = apply_conv(x, cp, stats=stats, apply_gn=(li > 0),
                              apply_relu=(li > 0),
                              emit_stats=(li + 1 < n_pn))
    seg_ids = indices.reshape(-1)
    # TODO(synk): data-dependent scatter-max kept in plain JAX glue.
    lv = jax.ops.segment_max(x, seg_ids, num_segments=v0)
    lv = jnp.where(jnp.isfinite(lv), lv, 0.0).astype(jnp.bfloat16)
    lv, stats = apply_conv(lv, params['pointnet_last'])    # fallback GN stats

    # Down path
    fine_values = []
    for i in range(mp['nr_downsamples']):
        for bp in params['down'][i]:
            lv, stats = apply_block(lv, stats, bp)
        fine_values.append(lv)
        lv, stats = apply_conv(lv, params['coarsen'][i], stats=stats,
                               emit_stats=False)
        v, c = lv.shape
        # TODO(synk): real CoarsenAct convolves onto the coarse lattice; pair-pooling stand-in.
        lv = lv.reshape(v // 2, 2, c).astype(jnp.float32).mean(axis=1)
        lv = lv.astype(jnp.bfloat16)
        stats = None                      # pooled in XLA -> stats recomputed lazily

    # Bottleneck
    for bp in params['bottleneck']:
        lv, stats = apply_block(lv, stats, bp)

    # Up path with concat skip connections
    for i in range(mp['nr_downsamples']):
        fine_lv = fine_values.pop()
        lv, stats = apply_conv(lv, params['finefy'][i], stats=stats,
                               emit_stats=False)
        # TODO(synk): real GnReluFinefy convolves onto the fine lattice; row-repeat stand-in.
        lv = jnp.repeat(lv, fine_lv.shape[0] // lv.shape[0], axis=0)
        lv = jnp.concatenate([lv, fine_lv], axis=1)
        stats = None                      # concat in XLA -> stats recomputed lazily
        for bp in params['up'][i]:
            lv, stats = apply_block(lv, stats, bp)

    # Slice back to points: barycentric gather + weighted sum in XLA glue
    # (data-dependent), then one fused lane-dense Pallas kernel doing
    # [N, C] @ [C, 128-padded] + bias + column-masked log-softmax.
    # TODO(synk): data-dependent row gather of splat vertices kept in plain JAX glue.
    gathered = lv[indices]                                       # [N, K, C]
    sliced = jnp.einsum('nkc,nk->nc', gathered.astype(jnp.float32),
                        weights).astype(jnp.bfloat16)            # [N, C]
    logp, sv = classify_logsoftmax(sliced, params['slice']['w'],
                                   params['slice']['b'], params['slice']['nc'])
    return logp, sv


# ----------------------------------------------------------------------------
if __name__ == "__main__":
    nr_classes = 5
    model_params = {
        'nr_downsamples': 2,
        'nr_blocks_down_stage': [1, 1],
        'nr_blocks_bottleneck': 1,
        'nr_blocks_up_stage': [1, 1],
        'nr_levels_down_with_normal_resnet': 2,
        'nr_levels_up_with_normal_resnet': 2,
        'compression_factor': 1.0,
        'dropout_last_layer': 0.0,
        'pointnet_channels_per_layer': [16, 32],
        'pointnet_start_nr_channels': 32,
    }

    n_points, d_in = 128, 4
    nr_vertices = 64

    key = jax.random.PRNGKey(0)
    kpos, kval, kparam = jax.random.split(key, 3)
    positions = jax.random.uniform(kpos, (n_points, 3), dtype=jnp.float32)
    values = jax.random.normal(kval, (n_points, d_in), dtype=jnp.float32)

    params = build_lnn(kparam, nr_classes, model_params, d_in, nr_vertices)

    logp, sv = lnn_forward(params, model_params, positions, values)
    jax.block_until_ready((logp, sv))

    assert logp.shape == (n_points, nr_classes)
    assert sv.shape == (n_points, nr_classes)
    assert bool(jnp.all(jnp.isfinite(logp)))
    print("KERNEL_OK")
</pallas_src>

<mosaic_0001>
module attributes {stable_mosaic.version = 11 : i64} {
  func.func @_fused_layer_kernel(%arg0: i32, %arg1: memref<128x8xf32, #tpu.memory_space<vmem>>, %arg2: memref<8x16xbf16, #tpu.memory_space<vmem>>, %arg3: memref<1x16xf32, #tpu.memory_space<vmem>>, %arg4: memref<128x16xbf16, #tpu.memory_space<vmem>>, %arg5: memref<1x8x16xf32, #tpu.memory_space<vmem>>, %arg6: memref<1x8x16xf32, #tpu.memory_space<vmem>>) attributes {dimension_semantics = [#tpu.dimension_semantics<parallel>], iteration_bounds = array<i64: 4>, scalar_prefetch = 0 : i64, scratch_operands = 0 : i64, tpu.core_type = #tpu.core_type<tc>, window_params = [{transform_indices = @transform_0, window_bounds = array<i64: 128, 8>}, {pipeline_mode = #tpu.pipeline_mode<synchronous>, transform_indices = @transform_1, window_bounds = array<i64: 8, 16>}, {pipeline_mode = #tpu.pipeline_mode<synchronous>, transform_indices = @transform_2, window_bounds = array<i64: 1, 16>}, {transform_indices = @transform_3, window_bounds = array<i64: 128, 16>}, {transform_indices = @transform_4, window_bounds = array<i64: 1, 8, 16>}, {transform_indices = @transform_5, window_bounds = array<i64: 1, 8, 16>}]} {
    %c0 = arith.constant 0 : index
    %c0_0 = arith.constant 0 : index
    %0 = vector.load %arg1[%c0, %c0_0] : memref<128x8xf32, #tpu.memory_space<vmem>>, vector<128x8xf32>
    %1 = arith.truncf %0 : vector<128x8xf32> to vector<128x8xbf16>
    %c0_1 = arith.constant 0 : index
    %c0_2 = arith.constant 0 : index
    %2 = vector.load %arg2[%c0_1, %c0_2] : memref<8x16xbf16, #tpu.memory_space<vmem>>, vector<8x16xbf16>
    %cst = arith.constant dense<0.000000e+00> : vector<128x16xf32>
    %3 = tpu.matmul %1, %2, %cst {dimension_numbers = #tpu.dot_dimension_numbers<[1], [0], [0], [1], [0, 0, 1, 1], [], []>} : vector<128x8xbf16>, vector<8x16xbf16>, vector<128x16xf32> -> vector<128x16xf32>
    %c0_3 = arith.constant 0 : index
    %c0_4 = arith.constant 0 : index
    %4 = vector.load %arg3[%c0_3, %c0_4] : memref<1x16xf32, #tpu.memory_space<vmem>>, vector<1x16xf32>
    %5 = vector.broadcast %4 : vector<1x16xf32> to vector<128x16xf32>
    %6 = arith.addf %3, %5 : vector<128x16xf32>
    %7 = arith.truncf %6 : vector<128x16xf32> to vector<128x16xbf16>
    %c0_5 = arith.constant 0 : index
    %c0_6 = arith.constant 0 : index
    %8 = vector.load %arg4[%c0_5, %c0_6] : memref<128x16xbf16, #tpu.memory_space<vmem>>, vector<128x16xbf16>
    tpu.vector_store %arg4[%c0_5, %c0_6], %7 {strides = array<i32>} : memref<128x16xbf16, #tpu.memory_space<vmem>>, vector<128x16xbf16>,
    %9 = arith.mulf %6, %6 : vector<128x16xf32>
    %cst_7 = arith.constant dense<0.000000e+00> : vector<16xf32>
    %10 = vector.multi_reduction <add>, %6, %cst_7 [0] : vector<128x16xf32> to vector<16xf32>
    %11 = vector.shape_cast %10 : vector<16xf32> to vector<1x16xf32>
    %cst_8 = arith.constant dense<0.000000e+00> : vector<16xf32>
    %12 = vector.multi_reduction <add>, %9, %cst_8 [0] : vector<128x16xf32> to vector<16xf32>
    %13 = vector.shape_cast %12 : vector<16xf32> to vector<1x16xf32>
    %14 = vector.shape_cast %11 : vector<1x16xf32> to vector<1x1x16xf32>
    %15 = vector.shape_cast %14 : vector<1x1x16xf32> to vector<1x1x16xf32>
    %16 = vector.broadcast %15 : vector<1x1x16xf32> to vector<1x8x16xf32>
    %c0_9 = arith.constant 0 : index
    %c0_10 = arith.constant 0 : index
    %c0_11 = arith.constant 0 : index
    %17 = vector.load %arg5[%c0_9, %c0_10, %c0_11] : memref<1x8x16xf32, #tpu.memory_space<vmem>>, vector<1x8x16xf32>
    tpu.vector_store %arg5[%c0_9, %c0_10, %c0_11], %16 {strides = array<i32>} : memref<1x8x16xf32, #tpu.memory_space<vmem>>, vector<1x8x16xf32>,
    %18 = vector.shape_cast %13 : vector<1x16xf32> to vector<1x1x16xf32>
    %19 = vector.shape_cast %18 : vector<1x1x16xf32> to vector<1x1x16xf32>
    %20 = vector.broadcast %19 : vector<1x1x16xf32> to vector<1x8x16xf32>
    %c0_12 = arith.constant 0 : index
    %c0_13 = arith.constant 0 : index
    %c0_14 = arith.constant 0 : index
    %21 = vector.load %arg6[%c0_12, %c0_13, %c0_14] : memref<1x8x16xf32, #tpu.memory_space<vmem>>, vector<1x8x16xf32>
    tpu.vector_store %arg6[%c0_12, %c0_13, %c0_14], %20 {strides = array<i32>} : memref<1x8x16xf32, #tpu.memory_space<vmem>>, vector<1x8x16xf32>,
    return
  }
  func.func @transform_0(%arg0: i32) -> (i32, i32) {
    %c0_i32 = arith.constant 0 : i32
    %c0_i32_0 = arith.constant 0 : i32
    return %arg0, %c0_i32 : i32, i32
  }
  func.func @transform_1(%arg0: i32) -> (i32, i32) {
    %c0_i32 = arith.constant 0 : i32
    %c0_i32_0 = arith.constant 0 : i32
    %c0_i32_1 = arith.constant 0 : i32
    return %c0_i32, %c0_i32_0 : i32, i32
  }
  func.func @transform_2(%arg0: i32) -> (i32, i32) {
    %c0_i32 = arith.constant 0 : i32
    %c0_i32_0 = arith.constant 0 : i32
    %c0_i32_1 = arith.constant 0 : i32
    return %c0_i32, %c0_i32_0 : i32, i32
  }
  func.func @transform_3(%arg0: i32) -> (i32, i32) {
    %c0_i32 = arith.constant 0 : i32
    %c0_i32_0 = arith.constant 0 : i32
    return %arg0, %c0_i32 : i32, i32
  }
  func.func @transform_4(%arg0: i32) -> (i32, i32, i32) {
    %c0_i32 = arith.constant 0 : i32
    %c0_i32_0 = arith.constant 0 : i32
    %c0_i32_1 = arith.constant 0 : i32
    return %arg0, %c0_i32, %c0_i32_0 : i32, i32, i32
  }
  func.func @transform_5(%arg0: i32) -> (i32, i32, i32) {
    %c0_i32 = arith.constant 0 : i32
    %c0_i32_0 = arith.constant 0 : i32
    %c0_i32_1 = arith.constant 0 : i32
    return %arg0, %c0_i32, %c0_i32_0 : i32, i32, i32
  }
}

</mosaic_0001>

<bundles_post_ra>
// kernel: tpu_custom_call.1
= control target key start
LH: loop header
LB: loop body
LE: loop exit
PB: predicated region body
PF: predicated region fallthrough
CT: control target
= control target key end

     0   :  { %11 = vsyncpa [#allocation3], 0  ;;  %s1107_s0 = inlined_call_operand.vmem [shape: f32[512,8], index: 0, kind: input, shape index: {}]   ;;  %s1108_s1 = inlined_call_operand.vmem [shape: bf16[8,16], index: 1, kind: input, shape index: {}]   ;;  %s1109_s2 = inlined_call_operand.vmem [shape: f32[1,16], index: 2, kind: input, shape index: {}]   ;;  %s1110_s3 = inlined_call_operand.vmem [shape: bf16[512,16], index: 3, kind: output, shape index: {0}]   ;;  %s1111_s4 = inlined_call_operand.hbm [shape: f32[4,8,16], index: 4, kind: output, shape index: {1}]   ;;  %s1112_s5 = inlined_call_operand.hbm [shape: f32[4,8,16], index: 5, kind: output, shape index: {2}]  }
   0x1   :  { %13 = vsyncpa [#allocation3 + $0x1], 0 }
   0x2   :  { %14 = vsyncpa [#allocation5], 0 }
   0x3   :  { %16 = vsyncpa [#allocation5 + $0x1], 0  ;;  %s842_s18 = smov 0   ;;  %s844_s19 = smov 0  }
   0x4   :  { %s846_s20 = smov 0   ;;  %s848_s21 = smov 0  }
   0x5 LB: > { %s863_s22 = sadd.s32 4294967295, %s810_s21   ;;  %s644_s23 = sadd.s32 4294967294, %s810_s21   ;;  %s810_s21 = sphi %s848_s21, %s1118_s21   ;;  %s806_s20 = sphi %s846_s20, %s1117_s20   ;;  %s802_s19 = sphi %s844_s19, %s1116_s19   ;;  %s798_s18 = sphi %s842_s18, %s1115_s18  }
   0x6   : > { %s867_s24 = sadd.s32 1, %s810_s21   ;;  %s123_s25 = sadd.s32 1, %s806_s20 }
   0x7   : > { %s120_s26 = ssub.s32 %s810_s21, %s867_s24  ;;  %p133_p0 = scmp.ne.s32.totalorder %s806_s20, %s802_s19 }
   0x8   : > { %p121_p1 = scmp.eq.s32.totalorder %s120_s26, 0  ;;  %p134_p2 = scmp.eq.s32.totalorder %s863_s22, 3 }
   0x9   : > { %p139_p3 = scmp.ne.s32.totalorder %s802_s19, %s798_s18  ;;  %p140_p4 = scmp.eq.s32.totalorder %s644_s23, 3 }
   0xa   : > { %s878_s27 = scalar_select %p121_p1, %s806_s20, %s123_s25  }
   0xb   : > { %p880_p5 = por %p134_p2, %p133_p0  ;;  %p884_p6 = por %p140_p4, %p139_p3 }
   0xc   : > { %p647_p7 = scmp.ge.s32.totalorder %s810_s21, 1  ;;  %p199_p8 = scmp.lt.s32.totalorder %s810_s21, 5 }
   0xe   : > { %p200_p9 = pnand %p647_p7, %p199_p8 }
   0xf   : > { %s650_s7 = sshll.u32 (!%p200_p9), %s863_s22, 4  ;;  %s1048_s23 = sand.u32 (!%p200_p9), 1, %s802_s19  }
  0x10   : > { %203 = sbr.rel (%p200_p9) target bundleno = 233 (0xe9), region = 32  ;;  %p238_p10 = scmp.lt.s32.totalorder (!%p200_p9), %s650_s7, 63 }
  0x11   : > { %s648_s25 = sshll.u32 (!%p200_p9), %s1048_s23, 3  ;;  %s664_s26 = sshll.u32 (!%p200_p9), %s863_s22, 3 }
  0x12   : > { %s522_s10 = scalar_lea.hbm (!%p200_p9), %s1112_s5, %s664_s26  ;;  %s236_s22 = scalar_lea.vmem (!%p200_p9), [#allocation4], %s648_s25 }
  0x13   : > { %s526_s15 = sshll.u32 (!%p200_p9), %s522_s10, 4  ;;  %s489_s16 = scalar_lea.sflag (!%p200_p9), [#allocation3], %s1048_s23  ;;  %s1062_s15 = int_to_ptr.hbm [resolvable:$true] %s526_s15 }
  0x14   : > { %s736_s6 = scalar_lea.hbm (!%p200_p9), %s1111_s4, 32 }
  0x15   : > { %v274_v0 = vld [vmem:[%s1108_s1] sm:$0xf]  ;;  %vm304_vm0 = vcmask 1043456   ;;  %s1120_s7 = smov (!%p238_p10, %s650_s7), 63  ;;  %vm279_vm1 = vcmask 64512   ;;  %vm373_vm2 = vcmask 125952  }
  0x16   : > { %v306_v1 = vsel %vm304_vm0, %v274_v0, 0  ;;  %s651_s8 = sshll.u32 %s1120_s7, 3  ;;  %v911_v26 = vld [vmem:[%s1109_s2] ss:$0 sm:$0xff]  ;;  %s653_s14 = sshll.u32 %s1120_s7, 2  ;;  %vm406_vm3 = vcmask 130048  }
  0x17   : > { %315 = vmatpush.bf16.msra.mxu0 %v306_v1  ;;  %668 = vmatpush.bf16.msra.mxu1 %v306_v1  ;;  %s241_s11 = scalar_lea.vmem %s1107_s0, %s651_s8  ;;  %s918_s17 = scalar_lea.vmem %s1110_s3, %s653_s14 }
  0x18   : > { %669 = vmatpush.bf16.msra.mxu2 %v306_v1  ;;  %670 = vmatpush.bf16.msra.mxu3 %v306_v1  ;;  %v250_v2 = vld [vmem:[%s241_s11] sm:$0xff]  ;;  %v251_v3 = vld [vmem:[%s241_s11 + $0x8] sm:$0xff]  ;;  %v252_v14 = vld [vmem:[%s241_s11 + $0x10] sm:$0xff]  ;;  %s508_s7 = scalar_lea.hbm %s1111_s4, %s664_s26  ;;  %s524_s14 = sshll.u32 %s236_s22, 4  ;;  %s1060_s14 = int_to_ptr.vmem [resolvable:$true] %s524_s14 }
  0x19   : > { %v254_v4 = vld [vmem:[%s241_s11 + $0x20] sm:$0xff]  ;;  %v266_v5 = vpack.c.bf16 %v251_v3, %v250_v2  ;;  %v255_v6 = vld [vmem:[%s241_s11 + $0x28] sm:$0xff]  ;;  %v253_v15 = vld [vmem:[%s241_s11 + $0x18] sm:$0xff]  ;;  %s512_s13 = sshll.u32 %s508_s7, 4  ;;  %s513_s13 = int_to_ptr.hbm [resolvable:$true] %s512_s13 }
  0x1a   : > { %v258_v7 = vld [vmem:[%s241_s11 + $0x40] sm:$0xff]  ;;  %v259_v8 = vld [vmem:[%s241_s11 + $0x48] sm:$0xff]  ;;  %v268_v9 = vpack.c.bf16 %v255_v6, %v254_v4  ;;  %v256_v16 = vld [vmem:[%s241_s11 + $0x30] sm:$0xff]  ;;  %v267_v22 = vpack.c.bf16 %v253_v15, %v252_v14 }
  0x1b   : > { %v270_v10 = vpack.c.bf16 %v259_v8, %v258_v7  ;;  %v262_v11 = vld [vmem:[%s241_s11 + $0x60] sm:$0xff]  ;;  %v263_v12 = vld [vmem:[%s241_s11 + $0x68] sm:$0xff]  ;;  %654 = vmatmul.msk.bf16.vlgmr.msra.gmra.mxu0 %vm279_vm1, %v266_v5  ;;  %v257_v17 = vld [vmem:[%s241_s11 + $0x38] sm:$0xff] }
  0x1c   : > { %v272_v13 = vpack.c.bf16 %v263_v12, %v262_v11  ;;  %656 = vmatmul.msk.bf16.vlgmr.msra.gmra.mxu1 %vm279_vm1, %v268_v9  ;;  %v260_v18 = vld [vmem:[%s241_s11 + $0x50] sm:$0xff]  ;;  %v261_v19 = vld [vmem:[%s241_s11 + $0x58] sm:$0xff]  ;;  %v269_v23 = vpack.c.bf16 %v257_v17, %v256_v16 }
  0x1d   : > { %658 = vmatmul.msk.bf16.vlgmr.msra.gmra.mxu2 %vm279_vm1, %v270_v10  ;;  %v264_v20 = vld [vmem:[%s241_s11 + $0x70] sm:$0xff]  ;;  %v265_v21 = vld [vmem:[%s241_s11 + $0x78] sm:$0xff]  ;;  %v271_v24 = vpack.c.bf16 %v261_v19, %v260_v18  ;;  %s229_s11 = scalar_lea.vmem [#allocation2], %s648_s25 }
  0x1e   : > { %660 = vmatmul.msk.bf16.vlgmr.msra.gmra.mxu3 %vm279_vm1, %v272_v13  ;;  %v273_v25 = vpack.c.bf16 %v265_v21, %v264_v20  ;;  %s510_s12 = sshll.u32 %s229_s11, 4  ;;  %s511_s12 = int_to_ptr.vmem [resolvable:$true] %s510_s12 }
  0x2b   : > { %655 = vmatmul.msk.bf16.gmra.mxu0 %vm279_vm1, %v267_v22 }
  0x2c   : > { %657 = vmatmul.msk.bf16.gmra.mxu1 %vm279_vm1, %v269_v23 }
  0x2d   : > { %659 = vmatmul.msk.bf16.gmra.mxu2 %vm279_vm1, %v271_v24 }
  0x2e   : > { %661 = vmatmul.msk.bf16.gmra.mxu3 %vm279_vm1, %v273_v25 }
  0x98   : > { %v317_v27 = vpop.f32.mrf.mxu0 }
  0x99   : > { %v318_v28 = vadd.f32 %v911_v26, %v317_v27  ;;  %v327_v29 = vpop.f32.mrf.mxu1 }
  0x9a   : > { %v921_v30 = vadd.f32 %v911_v26, %v327_v29 }
  0x9b   : > { %v357_v31 = vpack.c.bf16 %v318_v28, %v318_v28  ;;  %v390_v58 = vmul.f32 %v318_v28, %v318_v28  ;;  %v407_v61 = vsel %vm406_vm3, %v318_v28, 0.0 }
  0x9c   : > { %v361_v32 = vpack.c.bf16 %v921_v30, %v921_v30  ;;  %v394_v1 = vmul.f32 %v921_v30, %v921_v30  ;;  %v414_v22 = vsel %vm406_vm3, %v921_v30, 0.0 }
  0x9d   : > { %374 = vst.msk [vmem:[%s918_s17] sm:$0xf] %vm373_vm2, %v357_v31  ;;  %v444_v6 = vsel %vm406_vm3, %v390_v58, 0.0 }
  0x9e   : > { %378 = vst.msk [vmem:[%s918_s17 + $0x10] sm:$0xf] %vm373_vm2, %v361_v32  ;;  %v451_v28 = vsel %vm406_vm3, %v394_v1, 0.0 }
  0xa0   : > { %v337_v33 = vpop.f32.mrf.mxu2  ;;  %v319_v34 = vpop.f32.mrf.mxu0 }
  0xa1   : > { %v930_v35 = vadd.f32 %v911_v26, %v337_v33  ;;  %v347_v36 = vpop.f32.mrf.mxu3  ;;  %v320_v37 = vadd.f32 %v911_v26, %v319_v34  ;;  %v329_v38 = vpop.f32.mrf.mxu1 }
  0xa2   : > { %v934_v39 = vadd.f32 %v911_v26, %v347_v36  ;;  %v937_v40 = vadd.f32 %v911_v26, %v329_v38 }
  0xa3   : > { %v365_v41 = vpack.c.bf16 %v930_v35, %v930_v35  ;;  %v358_v42 = vpack.c.bf16 %v320_v37, %v320_v37  ;;  %v391_v54 = vmul.f32 %v320_v37, %v320_v37  ;;  %v408_v59 = vsel %vm406_vm3, %v320_v37, 0.0 }
  0xa4   : > { %v369_v43 = vpack.c.bf16 %v934_v39, %v934_v39  ;;  %v362_v44 = vpack.c.bf16 %v937_v40, %v937_v40  ;;  %v409_v2 = vadd.f32 %v408_v59, %v407_v61  ;;  %v395_v23 = vmul.f32 %v937_v40, %v937_v40 }
  0xa5   : > { %382 = vst.msk [vmem:[%s918_s17 + $0x20] sm:$0xf] %vm373_vm2, %v365_v41  ;;  %v445_v62 = vsel %vm406_vm3, %v391_v54, 0.0  ;;  %v416_v29 = vsel %vm406_vm3, %v937_v40, 0.0 }
  0xa6   : > { %375 = vst.msk [vmem:[%s918_s17 + $0x4] sm:$0xf] %vm373_vm2, %v358_v42  ;;  %v446_v11 = vadd.f32 %v445_v62, %v444_v6  ;;  %v453_v37 = vsel %vm406_vm3, %v395_v23, 0.0 }
  0xa7   : > { %379 = vst.msk [vmem:[%s918_s17 + $0x14] sm:$0xf] %vm373_vm2, %v362_v44 }
  0xa8   : > { %v339_v45 = vpop.f32.mrf.mxu2  ;;  %386 = vst.msk [vmem:[%s918_s17 + $0x30] sm:$0xf] %vm373_vm2, %v369_v43  ;;  %v322_v46 = vpop.f32.mrf.mxu0 }
  0xa9   : > { %v954_v47 = vadd.f32 %v911_v26, %v339_v45  ;;  %v349_v48 = vpop.f32.mrf.mxu3  ;;  %v323_v49 = vadd.f32 %v911_v26, %v322_v46  ;;  %v332_v50 = vpop.f32.mrf.mxu1  ;;  %v398_v45 = vmul.f32 %v930_v35, %v930_v35 }
  0xaa   : > { %v958_v51 = vadd.f32 %v911_v26, %v349_v48  ;;  %v333_v52 = vadd.f32 %v911_v26, %v332_v50 }
  0xab   : > { %v366_v53 = vpack.c.bf16 %v954_v47, %v954_v47  ;;  %v359_v55 = vpack.c.bf16 %v323_v49, %v323_v49  ;;  %v392_v60 = vmul.f32 %v323_v49, %v323_v49  ;;  %v410_v63 = vsel %vm406_vm3, %v323_v49, 0.0 }
  0xac   : > { %v370_v56 = vpack.c.bf16 %v958_v51, %v958_v51  ;;  %v363_v57 = vpack.c.bf16 %v333_v52, %v333_v52  ;;  %v411_v12 = vadd.f32 %v410_v63, %v409_v2  ;;  %v396_v31 = vmul.f32 %v333_v52, %v333_v52 }
  0xad   : > { %383 = vst.msk [vmem:[%s918_s17 + $0x24] sm:$0xf] %vm373_vm2, %v366_v53  ;;  %v447_v7 = vsel %vm406_vm3, %v392_v60, 0.0  ;;  %v418_v38 = vsel %vm406_vm3, %v333_v52, 0.0  ;;  %v422_v52 = vsel %vm406_vm3, %v930_v35, 0.0  ;;  %v424_v58 = vsel %vm406_vm3, %v954_v47, 0.0 }
  0xae   : > { %376 = vst.msk [vmem:[%s918_s17 + $0x8] sm:$0xf] %vm373_vm2, %v359_v55  ;;  %v448_v19 = vadd.f32 %v447_v7, %v446_v11  ;;  %v455_v46 = vsel %vm406_vm3, %v396_v31, 0.0  ;;  %v402_v2 = vmul.f32 %v934_v39, %v934_v39 }
  0xaf   : > { %380 = vst.msk [vmem:[%s918_s17 + $0x18] sm:$0xf] %vm373_vm2, %v363_v57  ;;  %v459_v57 = vsel %vm406_vm3, %v398_v45, 0.0 }
  0xb0   : > { %v342_v0 = vpop.f32.mrf.mxu2  ;;  %387 = vst.msk [vmem:[%s918_s17 + $0x34] sm:$0xf] %vm373_vm2, %v370_v56  ;;  %v324_v3 = vpop.f32.mrf.mxu0 }
  0xb1   : > { %v343_v4 = vadd.f32 %v911_v26, %v342_v0  ;;  %v352_v5 = vpop.f32.mrf.mxu3  ;;  %v325_v8 = vadd.f32 %v911_v26, %v324_v3  ;;  %v334_v9 = vpop.f32.mrf.mxu1 }
  0xb2   : > { %v984_v10 = vadd.f32 %v911_v26, %v352_v5  ;;  %v335_v13 = vadd.f32 %v911_v26, %v334_v9 }
  0xb3   : > { %v367_v14 = vpack.c.bf16 %v343_v4, %v343_v4  ;;  %v360_v15 = vpack.c.bf16 %v325_v8, %v325_v8  ;;  %v393_v16 = vmul.f32 %v325_v8, %v325_v8  ;;  %v412_v17 = vsel %vm406_vm3, %v325_v8, 0.0 }
  0xb4   : > { %v371_v18 = vpack.c.bf16 %v984_v10, %v984_v10  ;;  %v413_v20 = vadd.f32 %v412_v17, %v411_v12  ;;  %v364_v21 = vpack.c.bf16 %v335_v13, %v335_v13  ;;  %v397_v41 = vmul.f32 %v335_v13, %v335_v13 }
  0xb5   : > { %384 = vst.msk [vmem:[%s918_s17 + $0x28] sm:$0xf] %vm373_vm2, %v367_v14  ;;  %v449_v24 = vsel %vm406_vm3, %v393_v16, 0.0  ;;  %v420_v48 = vsel %vm406_vm3, %v335_v13, 0.0  ;;  %v400_v59 = vmul.f32 %v343_v4, %v343_v4  ;;  %v426_v35 = vsel %vm406_vm3, %v343_v4, 0.0 }
  0xb6   : > { %377 = vst.msk [vmem:[%s918_s17 + $0xc] sm:$0xf] %vm373_vm2, %v360_v15  ;;  %v415_v25 = vadd.f32 %v414_v22, %v413_v20  ;;  %v450_v27 = vadd.f32 %v449_v24, %v448_v19  ;;  %v457_v54 = vsel %vm406_vm3, %v397_v41, 0.0  ;;  %v403_v8 = vmul.f32 %v958_v51, %v958_v51 }
  0xb7   : > { %381 = vst.msk [vmem:[%s918_s17 + $0x1c] sm:$0xf] %vm373_vm2, %v364_v21  ;;  %v463_v3 = vsel %vm406_vm3, %v400_v59, 0.0  ;;  %v467_v12 = vsel %vm406_vm3, %v402_v2, 0.0  ;;  %v432_v13 = vsel %vm406_vm3, %v958_v51, 0.0  ;;  %v404_v14 = vmul.f32 %v984_v10, %v984_v10 }
  0xb8   : > { %v344_v32 = vpop.f32.mrf.mxu2  ;;  %388 = vst.msk [vmem:[%s918_s17 + $0x38] sm:$0xf] %vm373_vm2, %v371_v18  ;;  %v452_v30 = vadd.f32 %v451_v28, %v450_v27  ;;  %v417_v33 = vadd.f32 %v416_v29, %v415_v25  ;;  %v434_v17 = vsel %vm406_vm3, %v984_v10, 0.0 }
  0xb9   : > { %v345_v34 = vadd.f32 %v911_v26, %v344_v32  ;;  %v354_v36 = vpop.f32.mrf.mxu3  ;;  %v471_v21 = vsel %vm406_vm3, %v404_v14, 0.0 }
  0xba   : > { %v355_v42 = vadd.f32 %v911_v26, %v354_v36  ;;  %v419_v43 = vadd.f32 %v418_v38, %v417_v33  ;;  %v454_v40 = vadd.f32 %v453_v37, %v452_v30  ;;  %v399_v26 = vmul.f32 %v954_v47, %v954_v47 }
  0xbb   : > { %v368_v44 = vpack.c.bf16 %v345_v34, %v345_v34  ;;  %v401_v63 = vmul.f32 %v345_v34, %v345_v34  ;;  %v428_v5 = vsel %vm406_vm3, %v345_v34, 0.0  ;;  %v430_v47 = vsel %vm406_vm3, %v934_v39, 0.0 }
  0xbc   : > { %v372_v49 = vpack.c.bf16 %v355_v42, %v355_v42  ;;  %v421_v50 = vadd.f32 %v420_v48, %v419_v43  ;;  %v456_v53 = vadd.f32 %v455_v46, %v454_v40  ;;  %v461_v62 = vsel %vm406_vm3, %v399_v26, 0.0 }
  0xbd   : > { %385 = vst.msk [vmem:[%s918_s17 + $0x2c] sm:$0xf] %vm373_vm2, %v368_v44  ;;  %v465_v4 = vsel %vm406_vm3, %v401_v63, 0.0  ;;  %v469_v39 = vsel %vm406_vm3, %v403_v8, 0.0  ;;  %v405_v18 = vmul.f32 %v355_v42, %v355_v42  ;;  %v436_v22 = vsel %vm406_vm3, %v355_v42, 0.0 }
  0xbe   : > { %389 = vst.msk [vmem:[%s918_s17 + $0x3c] sm:$0xf] %vm373_vm2, %v372_v49  ;;  %v423_v55 = vadd.f32 %v422_v52, %v421_v50  ;;  %v458_v56 = vadd.f32 %v457_v54, %v456_v53  ;;  %s730_s17 = sshra.s32 %s513_s13, 4  ;;  %s731_s17 = int_to_ptr.hbm [resolvable:$true] %s730_s17 }
  0xbf   : > { %v473_v24 = vsel %vm406_vm3, %v405_v18, 0.0  ;;  %s732_s26 = scalar_lea.hbm %s731_s17, 8  ;;  %p737_p0 = scmp.lt.s32.totalorder %s731_s17, %s1111_s4 }
  0xc0   : > { %v460_v60 = vadd.f32 %v459_v57, %v458_v56  ;;  %v425_v61 = vadd.f32 %v424_v58, %v423_v55  ;;  %p733_p11 = scmp.ne.s32.totalorder %s731_s17, %s732_s26  ;;  %p738_p1 = scmp.lt.s32.totalorder %s736_s6, %s732_s26 }
  0xc2   : > { %v427_v0 = vadd.f32 %v426_v35, %v425_v61  ;;  %v462_v1 = vadd.f32 %v461_v62, %v460_v60  ;;  %p734_p12 = pnand %p733_p11, %p880_p5  ;;  %p739_p2 = por %p738_p1, %p737_p0 }
  0xc4   : > { %v464_v6 = vadd.f32 %v463_v3, %v462_v1  ;;  %v429_v7 = vadd.f32 %v428_v5, %v427_v0  ;;  %p735_p13 = pneg %p734_p12 }
  0xc6   : > { %v431_v9 = vadd.f32 %v430_v47, %v429_v7  ;;  %v466_v11 = vadd.f32 %v465_v4, %v464_v6  ;;  %p740_p3 = pnand %p739_p2, %p735_p13 }
  0xc8   : > { %v468_v15 = vadd.f32 %v467_v12, %v466_v11  ;;  %v433_v16 = vadd.f32 %v432_v13, %v431_v9 }
  0xca   : > { %v435_v19 = vadd.f32 %v434_v17, %v433_v16  ;;  %v470_v20 = vadd.f32 %v469_v39, %v468_v15 }
  0xcc   : > { %v472_v23 = vadd.f32 %v471_v21, %v470_v20  ;;  %v437_v51 = vadd.f32 %v436_v22, %v435_v19 }
  0xce   : > { %v438_v25 = vrot.slane %v437_v51, 4  ;;  %v474_v27 = vadd.f32 %v473_v24, %v472_v23 }
  0xd0   : > { %v439_v28 = vadd.f32 %v438_v25, %v437_v51  ;;  %v475_v10 = vrot.slane %v474_v27, 4 }
  0xd2   : > { %v440_v29 = vrot.slane %v439_v28, 2  ;;  %v476_v31 = vadd.f32 %v475_v10, %v474_v27 }
  0xd4   : > { %v441_v32 = vadd.f32 %v440_v29, %v439_v28  ;;  %v477_v30 = vrot.slane %v476_v31, 2 }
  0xd6   : > { %v442_v33 = vrot.slane %v441_v32, 1  ;;  %v478_v34 = vadd.f32 %v477_v30, %v476_v31 }
  0xd8   : > { %v443_v36 = vadd.f32 %v442_v33, %v441_v32  ;;  %v479_v37 = vrot.slane %v478_v34, 1 }
  0xda   : > { %481 = vst.msk [vmem:[%s229_s11] sm:$0xff] %vm406_vm3, %v443_v36  ;;  %v480_v38 = vadd.f32 %v479_v37, %v478_v34 }
  0xdb   : > { %743 = shalt.err (!%p740_p3)
}
  0xdc   : > { %671 = dma.vmem_to_hbm [thread:$0]  (%p880_p5), %s511_s12, 128, %s513_s13, %s489_s16   ;;  %482 = vst.msk [vmem:[%s236_s22] sm:$0xff] %vm406_vm3, %v480_v38 }
  0xdd   : > { %s494_s9 = scalar_lea.sflag [#allocation5], %s1048_s23  ;;  %s758_s10 = sshra.s32 %s1062_s15, 4  ;;  %s759_s10 = int_to_ptr.hbm [resolvable:$true] %s758_s10 }
  0xde   : > { %s760_s11 = scalar_lea.hbm %s759_s10, 8  ;;  %s764_s25 = scalar_lea.hbm %s1112_s5, 32 }
  0xdf   : > { %p761_p4 = scmp.ne.s32.totalorder %s759_s10, %s760_s11  ;;  %p765_p9 = scmp.lt.s32.totalorder %s759_s10, %s1112_s5 }
  0xe0   : > { %p766_p10 = scmp.lt.s32.totalorder %s764_s25, %s760_s11 }
  0xe1   : > { %p762_p7 = pnand %p761_p4, %p880_p5 }
  0xe2   : > { %p767_p11 = por %p766_p10, %p765_p9 }
  0xe3   : > { %p763_p8 = pneg %p762_p7 }
  0xe5   : > { %p768_p12 = pnand %p767_p11, %p763_p8 }
  0xe7   : > { %771 = shalt.err (!%p768_p12)
}
  0xe8   : > { %672 = dma.vmem_to_hbm [thread:$0]  (%p880_p5), %s1060_s14, 128, %s1062_s15, %s494_s9  }
  0xe9 PF: > { %p682_p13 = scmp.ge.s32.totalorder %s810_s21, 2  ;;  %s546_s23 = sand.u32 1, %s798_s18  }
  0xea   : > { %s547_s12 = scalar_lea.sflag [#allocation3], %s546_s23 }
  0xeb   : > { %p676_p0 = pnand %p682_p13, %p884_p6 }
  0xed   : > { %p677_p1 = pneg %p676_p0 }
  0xef   : > { %789 = dma.done.wait (%p677_p1), %s547_s12, 128  }
  0xf0   : > { %791 = vsyncadd (%p677_p1), %s547_s12, 4294967168  ;;  %s557_s13 = scalar_lea.sflag [#allocation5], %s546_s23 }
  0xf1   : > { %793 = dma.done.wait (%p677_p1), %s557_s13, 128  }
  0xf2   : > { %795 = vsyncadd (%p677_p1), %s557_s13, 4294967168  ;;  %p19_p5 = scmp.ge.s32.totalorder %s867_s24, 6   ;;  %s1115_s18 = smov %s802_s19 }
  0xf3   : > { %s1116_s19 = smov %s806_s20  ;;  %s1117_s20 = smov %s878_s27 }
  0xf4   : > { %s1118_s21 = smov %s867_s24  ;;  %21 = sbr.rel (!%p19_p5) target bundleno = 5 (0x5), region = 96 }
  0xf9   :  { %563 = vsyncpa [#allocation3], 1 }
  0xfa   :  { %565 = vsyncpa [#allocation3 + $0x1], 1 }
  0xfb   :  { %566 = vsyncpa [#allocation5], 1 }
  0xfc   :  { %568 = vsyncpa [#allocation5 + $0x1], 1 }

</bundles_post_ra>
